<compile_context>
chip_gen: v5e
topology: v5e:2x2
jax: 0.10.0
libtpu: 0.0.40
codegen_flags: <defaults>
</compile_context>

<pallas_src>
import functools

import jax
import jax.numpy as jnp
from jax.experimental import pallas as pl
from jax.experimental.pallas import tpu as pltpu

EPS = 1e-12  # F.normalize default eps
LANES = 128
SUBLANES = 8


def _dots_kernel(x_ref, u_ref, v_ref, acc_ref):
    # acc_ref: (1, 128) resident across the reduction grid; lanes 0..4 hold
    # [uu, uv, vv, xu, xv].
    @pl.when(pl.program_id(0) == 0)
    def _():
        acc_ref[...] = jnp.zeros_like(acc_ref)

    x = x_ref[...]
    u = u_ref[...]
    v = v_ref[...]

    uu = jnp.sum(u * u)
    uv = jnp.sum(u * v)
    vv = jnp.sum(v * v)
    xu = jnp.sum(x * u)
    xv = jnp.sum(x * v)

    lane = jax.lax.broadcasted_iota(jnp.int32, acc_ref.shape, 1)
    vals = (jnp.where(lane == 0, uu, 0.0)
            + jnp.where(lane == 1, uv, 0.0)
            + jnp.where(lane == 2, vv, 0.0)
            + jnp.where(lane == 3, xu, 0.0)
            + jnp.where(lane == 4, xv, 0.0))
    acc_ref[...] += vals


def _apply_kernel(coef_ref, x_ref, u_ref, v_ref, o_ref):
    # coef_ref: SMEM scalar-prefetch (2,) = [c_u, c_v]
    o_ref[...] = (x_ref[...]
                  + coef_ref[0] * u_ref[...]
                  + coef_ref[1] * v_ref[...])


@functools.partial(jax.jit, static_argnames=("block_rows",))
def rotation_attack(x, u, v, theta, *, block_rows=512):
    """x: (1, dim); u, v: (dim,); theta: scalar. Returns (1, dim)."""
    orig_dtype = x.dtype
    dim = x.shape[-1]

    xf = x.reshape(-1).astype(jnp.float32)
    uf = u.reshape(-1).astype(jnp.float32)
    vf = v.reshape(-1).astype(jnp.float32)

    # Pad dim so it reshapes to (rows, 128) with rows a multiple of the tile rows
    # (tile rows are themselves a multiple of 8). Padded region is zero, so the
    # dot products and the final apply (0 + c_u*0 + c_v*0 = 0) are unaffected.
    rows_needed = -(-dim // LANES)
    tr = min(block_rows, -(-rows_needed // SUBLANES) * SUBLANES)
    rows = -(-rows_needed // tr) * tr
    dim_p = rows * LANES
    pad = dim_p - dim
    if pad:
        xf = jnp.pad(xf, (0, pad))
        uf = jnp.pad(uf, (0, pad))
        vf = jnp.pad(vf, (0, pad))

    x2 = xf.reshape(rows, LANES)
    u2 = uf.reshape(rows, LANES)
    v2 = vf.reshape(rows, LANES)
    nblocks = rows // tr

    # ---- Pass 1: accumulate the 5 raw dot products (reduction grid) ----
    tile = pl.BlockSpec((tr, LANES), lambda i: (i, 0))
    dots = pl.pallas_call(
        _dots_kernel,
        out_shape=jax.ShapeDtypeStruct((1, LANES), jnp.float32),
        grid_spec=pltpu.PrefetchScalarGridSpec(
            num_scalar_prefetch=0,
            grid=(nblocks,),
            in_specs=[tile, tile, tile],
            out_specs=pl.BlockSpec((1, LANES), lambda i: (0, 0)),
        ),
        compiler_params=pltpu.CompilerParams(
            dimension_semantics=("arbitrary",)),
    )(x2, u2, v2)

    uu = dots[0, 0]
    uv = dots[0, 1]
    vv = dots[0, 2]
    xu = dots[0, 3]
    xv = dots[0, 4]

    # ---- Scalar coefficient math (hoisted out of the kernel; incl. cos/sin) ----
    theta = jnp.asarray(theta, jnp.float32)
    nu2 = jnp.square(jnp.maximum(jnp.sqrt(uu), EPS))
    alpha = uv / nu2
    vo2 = jnp.maximum(vv - 2.0 * alpha * uv + alpha * alpha * uu, 0.0)
    nv2 = jnp.square(jnp.maximum(jnp.sqrt(vo2), EPS))
    beta = (xv - alpha * xu) / nv2
    cm = jnp.cos(theta) - 1.0
    sm = jnp.sin(theta) - 1.0
    c_u = cm * xu / nu2 - sm * beta * alpha
    c_v = sm * beta
    coeffs = jnp.stack([c_u, c_v]).astype(jnp.float32)

    # ---- Pass 2: fused apply out = x + c_u*u + c_v*v (parallel grid) ----
    tile_p = pl.BlockSpec((tr, LANES), lambda i, coef: (i, 0))
    out2 = pl.pallas_call(
        _apply_kernel,
        out_shape=jax.ShapeDtypeStruct((rows, LANES), jnp.float32),
        grid_spec=pltpu.PrefetchScalarGridSpec(
            num_scalar_prefetch=1,
            grid=(nblocks,),
            in_specs=[tile_p, tile_p, tile_p],
            out_specs=tile_p,
        ),
        compiler_params=pltpu.CompilerParams(
            dimension_semantics=("parallel",)),
    )(coeffs, x2, u2, v2)

    out = out2.reshape(dim_p)[:dim].reshape(1, dim).astype(orig_dtype)
    return out


def rotation_attack_ref(x, u, v, theta):
    xf = x.reshape(-1).astype(jnp.float32)
    u = u.astype(jnp.float32)
    v = v.astype(jnp.float32)
    u_n = u / jnp.maximum(jnp.linalg.norm(u), EPS)
    v_o = v - jnp.dot(u_n, v) * u_n
    v_n = v_o / jnp.maximum(jnp.linalg.norm(v_o), EPS)
    pu = jnp.dot(xf, u_n) * u_n
    pv = jnp.dot(xf, v_n) * v_n
    rest = xf - pu - pv
    rot = jnp.cos(theta) * pu + jnp.sin(theta) * pv + rest
    return rot[None, :]


if __name__ == "__main__":
    theta = jnp.float32(0.4)
    # (dim, block_rows): aligned single-block, padded (non-multiple-of-128),
    # and multi-block reduction/apply.
    cases = [(1024, 512), (1000, 512), (4096, 8)]
    for dim, br in cases:
        key = jax.random.fold_in(jax.random.PRNGKey(0), dim)
        kx, ku, kv = jax.random.split(key, 3)
        x = jax.random.normal(kx, (1, dim), dtype=jnp.float32)
        u = jax.random.normal(ku, (dim,), dtype=jnp.float32)
        v = jax.random.normal(kv, (dim,), dtype=jnp.float32)

        out = jax.block_until_ready(rotation_attack(x, u, v, theta, block_rows=br))
        ref = rotation_attack_ref(x, u, v, theta)

        assert out.shape == (1, dim), (out.shape, dim)
        assert jnp.allclose(out, ref, atol=1e-4, rtol=1e-4), f"mismatch at dim={dim}"

    print("KERNEL_OK")
</pallas_src>

<mosaic_0001>
module attributes {stable_mosaic.version = 11 : i64} {
  func.func @_dots_kernel(%arg0: i32, %arg1: memref<8x128xf32, #tpu.memory_space<vmem>>, %arg2: memref<8x128xf32, #tpu.memory_space<vmem>>, %arg3: memref<8x128xf32, #tpu.memory_space<vmem>>, %arg4: memref<1x128xf32, #tpu.memory_space<vmem>>) attributes {dimension_semantics = [#tpu.dimension_semantics<arbitrary>], iteration_bounds = array<i64: 1>, scalar_prefetch = 0 : i64, scratch_operands = 0 : i64, tpu.core_type = #tpu.core_type<tc>, window_params = [{transform_indices = @transform_0, window_bounds = array<i64: 8, 128>}, {transform_indices = @transform_1, window_bounds = array<i64: 8, 128>}, {transform_indices = @transform_2, window_bounds = array<i64: 8, 128>}, {pipeline_mode = #tpu.pipeline_mode<synchronous>, transform_indices = @transform_3, window_bounds = array<i64: 1, 128>}]} {
    %c0_i32 = arith.constant 0 : i32
    %0 = arith.cmpi eq, %arg0, %c0_i32 : i32
    %1 = arith.extui %0 : i1 to i32
    %c0_i32_0 = arith.constant 0 : i32
    %2 = arith.cmpi ne, %1, %c0_i32_0 : i32
    scf.if %2 {
      %cst_20 = arith.constant 0.000000e+00 : f32
      %64 = vector.broadcast %cst_20 : f32 to vector<1x128xf32>
      %c0_21 = arith.constant 0 : index
      %c0_22 = arith.constant 0 : index
      %65 = vector.load %arg4[%c0_21, %c0_22] : memref<1x128xf32, #tpu.memory_space<vmem>>, vector<1x128xf32>
      tpu.vector_store %arg4[%c0_21, %c0_22], %64 {strides = array<i32>} : memref<1x128xf32, #tpu.memory_space<vmem>>, vector<1x128xf32>,
    } else {
    }
    %c0 = arith.constant 0 : index
    %c0_1 = arith.constant 0 : index
    %3 = vector.load %arg1[%c0, %c0_1] : memref<8x128xf32, #tpu.memory_space<vmem>>, vector<8x128xf32>
    %c0_2 = arith.constant 0 : index
    %c0_3 = arith.constant 0 : index
    %4 = vector.load %arg2[%c0_2, %c0_3] : memref<8x128xf32, #tpu.memory_space<vmem>>, vector<8x128xf32>
    %c0_4 = arith.constant 0 : index
    %c0_5 = arith.constant 0 : index
    %5 = vector.load %arg3[%c0_4, %c0_5] : memref<8x128xf32, #tpu.memory_space<vmem>>, vector<8x128xf32>
    %6 = arith.mulf %4, %4 : vector<8x128xf32>
    %7 = vector.shape_cast %6 : vector<8x128xf32> to vector<1x8x128xf32>
    %cst = arith.constant dense<0.000000e+00> : vector<1xf32>
    %8 = vector.multi_reduction <add>, %7, %cst [1, 2] : vector<1x8x128xf32> to vector<1xf32>
    %9 = vector.shape_cast %8 : vector<1xf32> to vector<1x1x1xf32>
    %10 = vector.extract %9[0, 0, 0] : f32 from vector<1x1x1xf32>
    %11 = arith.mulf %4, %5 : vector<8x128xf32>
    %12 = vector.shape_cast %11 : vector<8x128xf32> to vector<1x8x128xf32>
    %cst_6 = arith.constant dense<0.000000e+00> : vector<1xf32>
    %13 = vector.multi_reduction <add>, %12, %cst_6 [1, 2] : vector<1x8x128xf32> to vector<1xf32>
    %14 = vector.shape_cast %13 : vector<1xf32> to vector<1x1x1xf32>
    %15 = vector.extract %14[0, 0, 0] : f32 from vector<1x1x1xf32>
    %16 = arith.mulf %5, %5 : vector<8x128xf32>
    %17 = vector.shape_cast %16 : vector<8x128xf32> to vector<1x8x128xf32>
    %cst_7 = arith.constant dense<0.000000e+00> : vector<1xf32>
    %18 = vector.multi_reduction <add>, %17, %cst_7 [1, 2] : vector<1x8x128xf32> to vector<1xf32>
    %19 = vector.shape_cast %18 : vector<1xf32> to vector<1x1x1xf32>
    %20 = vector.extract %19[0, 0, 0] : f32 from vector<1x1x1xf32>
    %21 = arith.mulf %3, %4 : vector<8x128xf32>
    %22 = vector.shape_cast %21 : vector<8x128xf32> to vector<1x8x128xf32>
    %cst_8 = arith.constant dense<0.000000e+00> : vector<1xf32>
    %23 = vector.multi_reduction <add>, %22, %cst_8 [1, 2] : vector<1x8x128xf32> to vector<1xf32>
    %24 = vector.shape_cast %23 : vector<1xf32> to vector<1x1x1xf32>
    %25 = vector.extract %24[0, 0, 0] : f32 from vector<1x1x1xf32>
    %26 = arith.mulf %3, %5 : vector<8x128xf32>
    %27 = vector.shape_cast %26 : vector<8x128xf32> to vector<1x8x128xf32>
    %cst_9 = arith.constant dense<0.000000e+00> : vector<1xf32>
    %28 = vector.multi_reduction <add>, %27, %cst_9 [1, 2] : vector<1x8x128xf32> to vector<1xf32>
    %29 = vector.shape_cast %28 : vector<1xf32> to vector<1x1x1xf32>
    %30 = vector.extract %29[0, 0, 0] : f32 from vector<1x1x1xf32>
    %31 = tpu.iota {dimensions = array<i32: 1>} : vector<1x128xi32>
    %c0_i32_10 = arith.constant 0 : i32
    %32 = vector.broadcast %c0_i32_10 : i32 to vector<1x128xi32>
    %33 = arith.cmpi eq, %31, %32 : vector<1x128xi32>
    %cst_11 = arith.constant 0.000000e+00 : f32
    %34 = vector.broadcast %10 : f32 to vector<1x128xf32>
    %35 = vector.broadcast %cst_11 : f32 to vector<1x128xf32>
    %36 = arith.select %33, %34, %35 : vector<1x128xi1>, vector<1x128xf32>
    %c1_i32 = arith.constant 1 : i32
    %37 = vector.broadcast %c1_i32 : i32 to vector<1x128xi32>
    %38 = arith.cmpi eq, %31, %37 : vector<1x128xi32>
    %cst_12 = arith.constant 0.000000e+00 : f32
    %39 = vector.broadcast %15 : f32 to vector<1x128xf32>
    %40 = vector.broadcast %cst_12 : f32 to vector<1x128xf32>
    %41 = arith.select %38, %39, %40 : vector<1x128xi1>, vector<1x128xf32>
    %42 = arith.addf %36, %41 : vector<1x128xf32>
    %c2_i32 = arith.constant 2 : i32
    %43 = vector.broadcast %c2_i32 : i32 to vector<1x128xi32>
    %44 = arith.cmpi eq, %31, %43 : vector<1x128xi32>
    %cst_13 = arith.constant 0.000000e+00 : f32
    %45 = vector.broadcast %20 : f32 to vector<1x128xf32>
    %46 = vector.broadcast %cst_13 : f32 to vector<1x128xf32>
    %47 = arith.select %44, %45, %46 : vector<1x128xi1>, vector<1x128xf32>
    %48 = arith.addf %42, %47 : vector<1x128xf32>
    %c3_i32 = arith.constant 3 : i32
    %49 = vector.broadcast %c3_i32 : i32 to vector<1x128xi32>
    %50 = arith.cmpi eq, %31, %49 : vector<1x128xi32>
    %cst_14 = arith.constant 0.000000e+00 : f32
    %51 = vector.broadcast %25 : f32 to vector<1x128xf32>
    %52 = vector.broadcast %cst_14 : f32 to vector<1x128xf32>
    %53 = arith.select %50, %51, %52 : vector<1x128xi1>, vector<1x128xf32>
    %54 = arith.addf %48, %53 : vector<1x128xf32>
    %c4_i32 = arith.constant 4 : i32
    %55 = vector.broadcast %c4_i32 : i32 to vector<1x128xi32>
    %56 = arith.cmpi eq, %31, %55 : vector<1x128xi32>
    %cst_15 = arith.constant 0.000000e+00 : f32
    %57 = vector.broadcast %30 : f32 to vector<1x128xf32>
    %58 = vector.broadcast %cst_15 : f32 to vector<1x128xf32>
    %59 = arith.select %56, %57, %58 : vector<1x128xi1>, vector<1x128xf32>
    %60 = arith.addf %54, %59 : vector<1x128xf32>
    %c0_16 = arith.constant 0 : index
    %c0_17 = arith.constant 0 : index
    %61 = vector.load %arg4[%c0_16, %c0_17] : memref<1x128xf32, #tpu.memory_space<vmem>>, vector<1x128xf32>
    %62 = arith.addf %61, %60 : vector<1x128xf32>
    %c0_18 = arith.constant 0 : index
    %c0_19 = arith.constant 0 : index
    %63 = vector.load %arg4[%c0_18, %c0_19] : memref<1x128xf32, #tpu.memory_space<vmem>>, vector<1x128xf32>
    tpu.vector_store %arg4[%c0_18, %c0_19], %62 {strides = array<i32>} : memref<1x128xf32, #tpu.memory_space<vmem>>, vector<1x128xf32>,
    return
  }
  func.func @transform_0(%arg0: i32) -> (i32, i32) {
    %c0_i32 = arith.constant 0 : i32
    %c0_i32_0 = arith.constant 0 : i32
    return %arg0, %c0_i32 : i32, i32
  }
  func.func @transform_1(%arg0: i32) -> (i32, i32) {
    %c0_i32 = arith.constant 0 : i32
    %c0_i32_0 = arith.constant 0 : i32
    return %arg0, %c0_i32 : i32, i32
  }
  func.func @transform_2(%arg0: i32) -> (i32, i32) {
    %c0_i32 = arith.constant 0 : i32
    %c0_i32_0 = arith.constant 0 : i32
    return %arg0, %c0_i32 : i32, i32
  }
  func.func @transform_3(%arg0: i32) -> (i32, i32) {
    %c0_i32 = arith.constant 0 : i32
    %c0_i32_0 = arith.constant 0 : i32
    %c0_i32_1 = arith.constant 0 : i32
    return %c0_i32, %c0_i32_0 : i32, i32
  }
}

module attributes {stable_mosaic.version = 11 : i64} {
  func.func @_apply_kernel(%arg0: i32, %arg1: memref<2xf32, #tpu.memory_space<smem>>, %arg2: memref<8x128xf32, #tpu.memory_space<vmem>>, %arg3: memref<8x128xf32, #tpu.memory_space<vmem>>, %arg4: memref<8x128xf32, #tpu.memory_space<vmem>>, %arg5: memref<8x128xf32, #tpu.memory_space<vmem>>) attributes {dimension_semantics = [#tpu.dimension_semantics<parallel>], iteration_bounds = array<i64: 1>, scalar_prefetch = 1 : i64, scratch_operands = 0 : i64, tpu.core_type = #tpu.core_type<tc>, window_params = [{transform_indices = @transform_0, window_bounds = array<i64: 8, 128>}, {transform_indices = @transform_1, window_bounds = array<i64: 8, 128>}, {transform_indices = @transform_2, window_bounds = array<i64: 8, 128>}, {transform_indices = @transform_3, window_bounds = array<i64: 8, 128>}]} {
    %c0 = arith.constant 0 : index
    %c0_0 = arith.constant 0 : index
    %0 = vector.load %arg2[%c0, %c0_0] : memref<8x128xf32, #tpu.memory_space<vmem>>, vector<8x128xf32>
    %c0_1 = arith.constant 0 : index
    %1 = memref.load %arg1[%c0_1] : memref<2xf32, #tpu.memory_space<smem>>
    %c0_2 = arith.constant 0 : index
    %c0_3 = arith.constant 0 : index
    %2 = vector.load %arg3[%c0_2, %c0_3] : memref<8x128xf32, #tpu.memory_space<vmem>>, vector<8x128xf32>
    %3 = vector.broadcast %1 : f32 to vector<8x128xf32>
    %4 = arith.mulf %3, %2 : vector<8x128xf32>
    %5 = arith.addf %0, %4 : vector<8x128xf32>
    %c1 = arith.constant 1 : index
    %6 = memref.load %arg1[%c1] : memref<2xf32, #tpu.memory_space<smem>>
    %c0_4 = arith.constant 0 : index
    %c0_5 = arith.constant 0 : index
    %7 = vector.load %arg4[%c0_4, %c0_5] : memref<8x128xf32, #tpu.memory_space<vmem>>, vector<8x128xf32>
    %8 = vector.broadcast %6 : f32 to vector<8x128xf32>
    %9 = arith.mulf %8, %7 : vector<8x128xf32>
    %10 = arith.addf %5, %9 : vector<8x128xf32>
    %c0_6 = arith.constant 0 : index
    %c0_7 = arith.constant 0 : index
    %11 = vector.load %arg5[%c0_6, %c0_7] : memref<8x128xf32, #tpu.memory_space<vmem>>, vector<8x128xf32>
    tpu.vector_store %arg5[%c0_6, %c0_7], %10 {strides = array<i32>} : memref<8x128xf32, #tpu.memory_space<vmem>>, vector<8x128xf32>,
    return
  }
  func.func @transform_0(%arg0: i32, %arg1: memref<2xf32, #tpu.memory_space<smem>>) -> (i32, i32) {
    %c0_i32 = arith.constant 0 : i32
    %c0_i32_0 = arith.constant 0 : i32
    return %arg0, %c0_i32 : i32, i32
  }
  func.func @transform_1(%arg0: i32, %arg1: memref<2xf32, #tpu.memory_space<smem>>) -> (i32, i32) {
    %c0_i32 = arith.constant 0 : i32
    %c0_i32_0 = arith.constant 0 : i32
    return %arg0, %c0_i32 : i32, i32
  }
  func.func @transform_2(%arg0: i32, %arg1: memref<2xf32, #tpu.memory_space<smem>>) -> (i32, i32) {
    %c0_i32 = arith.constant 0 : i32
    %c0_i32_0 = arith.constant 0 : i32
    return %arg0, %c0_i32 : i32, i32
  }
  func.func @transform_3(%arg0: i32, %arg1: memref<2xf32, #tpu.memory_space<smem>>) -> (i32, i32) {
    %c0_i32 = arith.constant 0 : i32
    %c0_i32_0 = arith.constant 0 : i32
    return %arg0, %c0_i32 : i32, i32
  }
}

</mosaic_0001>

<bundles_post_ra>
// kernel: rotation_attack.2
= control target key start
LH: loop header
LB: loop body
LE: loop exit
PB: predicated region body
PF: predicated region fallthrough
CT: control target
= control target key end

     0   :  { %8 = vsyncpa [#allocation3], 0  ;;  %s275_s0 = inlined_call_operand.hbm [shape: f32[8,128], index: 0, kind: input, shape index: {}]   ;;  %s276_s1 = inlined_call_operand.hbm [shape: f32[8,128], index: 1, kind: input, shape index: {}]   ;;  %s277_s2 = inlined_call_operand.hbm [shape: f32[8,128], index: 2, kind: input, shape index: {}]   ;;  %s278_s3 = inlined_call_operand.vmem [shape: f32[1,128], index: 3, kind: output, shape index: {}]  }
   0x1   :  { %9 = vsyncpa [#allocation5], 0  ;;  %s26_s14 = sshll.u32 %s276_s1, 4  ;;  %s233_s15 = smov [#allocation4]   ;;  %s27_s14 = int_to_ptr.hbm [resolvable:$true] %s26_s14 }
   0x2   :  { %s28_s16 = sshll.u32 %s233_s15, 4  ;;  %s15_s19 = sshll.u32 %s275_s0, 4  ;;  %s29_s16 = int_to_ptr.vmem [resolvable:$true] %s28_s16  ;;  %s16_s19 = int_to_ptr.hbm [resolvable:$true] %s15_s19 }
   0x3   :  { %31 = dma.hbm_to_vmem [thread:$0]  %s27_s14, 128, %s29_s16, [#allocation5]  }
   0x4   :  { %s234_s20 = smov [#allocation2]   ;;  %s37_s24 = sshll.u32 %s277_s2, 4  ;;  %s38_s24 = int_to_ptr.hbm [resolvable:$true] %s37_s24 }
   0x5   :  { %s17_s21 = sshll.u32 %s234_s20, 4  ;;  %s235_s1 = smov [#allocation6]   ;;  %s18_s21 = int_to_ptr.vmem [resolvable:$true] %s17_s21 }
   0x6   :  { %20 = dma.hbm_to_vmem [thread:$0]  %s16_s19, 128, %s18_s21, [#allocation3]  }
   0x7   :  { %s39_s25 = sshll.u32 %s235_s1, 4  ;;  %s40_s25 = int_to_ptr.vmem [resolvable:$true] %s39_s25 }
   0x8   :  { %42 = dma.hbm_to_vmem [thread:$0]  %s38_s24, 128, %s40_s25, [#allocation5]  }
   0x9   :  { %229 = dma.done.wait [#allocation3], 128  }
   0xa   :  { %230 = vsyncadd [#allocation3], 4294967168 }
   0xb   :  { %231 = dma.done.wait [#allocation5], 256  }
   0xc   :  { %232 = vsyncadd [#allocation5], 4294967040  ;;  %v236_v0 = vmov 0.0   ;;  %v62_v1 = vld [vmem:[#allocation6] sm:$0xff]  ;;  %v61_v2 = vld [vmem:[#allocation4] sm:$0xff]  ;;  %v113_v44 = vlaneseq }
   0xd   :  { %59 = vst [vmem:[%s278_s3] sm:$0x1] %v236_v0  ;;  %v60_v3 = vld [vmem:[#allocation2] sm:$0xff]  ;;  %v83_v4 = vmul.f32 %v62_v1, %v62_v1  ;;  %v63_v5 = vmul.f32 %v61_v2, %v61_v2  ;;  %v73_v7 = vmul.f32 %v62_v1, %v61_v2 }
   0xe   :  { %v103_v6 = vmul.f32 %v62_v1, %v60_v3  ;;  %v93_v8 = vmul.f32 %v61_v2, %v60_v3  ;;  %v114_v45 = vand.u32 127, %v113_v44 }
   0xf   :  { %84 = vadd.xlane.f32.xlu1 %v83_v4  ;;  %64 = vadd.xlane.f32.xlu0 %v63_v5 }
  0x10   :  { %104 = vadd.xlane.f32.xlu2 %v103_v6  ;;  %vm115_vm0 = vcmp.eq.s32.totalorder %v114_v45, 0  ;;  %vm118_vm1 = vcmp.eq.s32.totalorder %v114_v45, 1  ;;  %vm122_vm2 = vcmp.eq.s32.totalorder %v114_v45, 2  ;;  %vm126_vm3 = vcmp.eq.s32.totalorder %v114_v45, 3 }
  0x11   :  { %vm130_vm4 = vcmp.eq.s32.totalorder %v114_v45, 4 }
  0x14   :  { %v134_v59 = vld [vmem:[%s278_s3] sm:$0x1] }
  0x17   :  { %74 = vadd.xlane.f32.xlu0 %v73_v7  ;;  %94 = vadd.xlane.f32.xlu1 %v93_v8 }
  0x82   :  { %v85_v9 = vpop.xlane.xlu1 %84  ;;  %v65_v10 = vpop.xlane.xlu0 %64 }
  0x83   :  { %v86_v11 = vrot.slane %v85_v9, 4  ;;  %v66_v12 = vrot.slane %v65_v10, 4  ;;  %v105_v13 = vpop.xlane.xlu2 %104 }
  0x84   :  { %v106_v14 = vrot.slane %v105_v13, 4 }
  0x85   :  { %v67_v15 = vadd.f32 %v66_v12, %v65_v10  ;;  %v87_v16 = vadd.f32 %v86_v11, %v85_v9 }
  0x86   :  { %v107_v17 = vadd.f32 %v106_v14, %v105_v13 }
  0x87   :  { %v68_v18 = vrot.slane %v67_v15, 2  ;;  %v88_v20 = vrot.slane %v87_v16, 2 }
  0x88   :  { %v108_v22 = vrot.slane %v107_v17, 2 }
  0x89   :  { %v69_v19 = vadd.f32 %v68_v18, %v67_v15  ;;  %v89_v31 = vadd.f32 %v88_v20, %v87_v16 }
  0x8a   :  { %v75_v21 = vpop.xlane.xlu0 %74  ;;  %v95_v23 = vpop.xlane.xlu1 %94  ;;  %v109_v30 = vadd.f32 %v108_v22, %v107_v17 }
  0x8b   :  { %v76_v24 = vrot.slane %v75_v21, 4  ;;  %v96_v25 = vrot.slane %v95_v23, 4  ;;  %v70_v26 = vrot.slane %v69_v19, 1  ;;  %v90_v36 = vrot.slane %v89_v31, 1 }
  0x8c   :  { %v110_v37 = vrot.slane %v109_v30, 1 }
  0x8d   :  { %v77_v27 = vadd.f32 %v76_v24, %v75_v21  ;;  %v97_v28 = vadd.f32 %v96_v25, %v95_v23  ;;  %v71_v29 = vadd.f32 %v70_v26, %v69_v19  ;;  %v91_v42 = vadd.f32 %v90_v36, %v89_v31 }
  0x8e   :  { %v111_v43 = vadd.f32 %v110_v37, %v109_v30 }
  0x8f   :  { %v78_v32 = vrot.slane %v77_v27, 2  ;;  %v98_v33 = vrot.slane %v97_v28, 2  ;;  %143 = vpush %v71_v29 }
  0x91   :  { %v79_v34 = vadd.f32 %v78_v32, %v77_v27  ;;  %v99_v35 = vadd.f32 %v98_v33, %v97_v28 }
  0x93   :  { %v80_v38 = vrot.slane %v79_v34, 1  ;;  %v100_v39 = vrot.slane %v99_v35, 1 }
  0x95   :  { %v81_v40 = vadd.f32 %v80_v38, %v79_v34  ;;  %v101_v41 = vadd.f32 %v100_v39, %v99_v35 }
  0x97   :  { %145 = vpush %v81_v40 }
  0x98   :  { %147 = vpush %v91_v42 }
  0x99   :  { %149 = vpush %v101_v41 }
  0x9a   :  { %151 = vpush %v111_v43 }
  0xc0   :  { %s144_s2 = spop %143 }
  0xc1   :  { %v116_v46 = vstv %s144_s2 }
  0xc2   :  { %v117_v48 = vsel %vm115_vm0, %v116_v46, 0.0 }
  0xc8   :  { %s146_s27 = spop %145 }
  0xc9   :  { %v119_v47 = vstv %s146_s27  ;;  %s148_s28 = spop %147 }
  0xca   :  { %v120_v49 = vsel %vm118_vm1, %v119_v47, 0.0  ;;  %v123_v50 = vstv %s148_s28  ;;  %s150_s29 = spop %149 }
  0xcb   :  { %v121_v51 = vadd.f32 %v120_v49, %v117_v48  ;;  %v127_v52 = vstv %s150_s29  ;;  %s152_s30 = spop %151  ;;  %v124_v53 = vsel %vm122_vm2, %v123_v50, 0.0 }
  0xcc   :  { %v131_v55 = vstv %s152_s30  ;;  %v128_v56 = vsel %vm126_vm3, %v127_v52, 0.0 }
  0xcd   :  { %v125_v54 = vadd.f32 %v124_v53, %v121_v51  ;;  %v132_v58 = vsel %vm130_vm4, %v131_v55, 0.0 }
  0xcf   :  { %v129_v57 = vadd.f32 %v128_v56, %v125_v54 }
  0xd1   :  { %v133_v60 = vadd.f32 %v132_v58, %v129_v57 }
  0xd3   :  { %v135_v61 = vadd.f32 %v134_v59, %v133_v60 }
  0xd5   :  { %136 = vst [vmem:[%s278_s3] sm:$0x1] %v135_v61 }
  0xd6   :  { %141 = vsyncpa [#allocation3], 1 }
  0xd7   :  { %142 = vsyncpa [#allocation5], 1 }

// kernel: rotation_attack.3
= control target key start
LH: loop header
LB: loop body
LE: loop exit
PB: predicated region body
PF: predicated region fallthrough
CT: control target
= control target key end

     0   :  { %s95_s18 = smov [#allocation3]   ;;  %s137_s0 = inlined_call_operand.vmem [shape: f32[2], index: 0, kind: input, shape index: {}]   ;;  %s138_s1 = inlined_call_operand.vmem [shape: f32[8,128], index: 1, kind: input, shape index: {}]   ;;  %s139_s2 = inlined_call_operand.vmem [shape: f32[8,128], index: 2, kind: input, shape index: {}]   ;;  %s140_s3 = inlined_call_operand.vmem [shape: f32[8,128], index: 3, kind: input, shape index: {}]   ;;  %s141_s4 = inlined_call_operand.hbm [shape: f32[8,128], index: 4, kind: output, shape index: {}]  }
   0x1   :  { %s10_s17 = sshll.u32 %s137_s0, 4  ;;  %s11_s17 = int_to_ptr.vmem [resolvable:$true] %s10_s17 }
   0x2   :  { %13 = dma.vmem_to_smem %s11_s17, 16, %s95_s18, [#allocation2] }
   0x3   :  { %91 = dma.done.wait [#allocation2], 16 }
   0x4   :  { %92 = vsyncadd [#allocation2], 4294967280 }
   0x5   :  { %16 = sfence }
   0x6   :  { %s25_s19 = sld [smem:[#allocation3]] }
   0x7   :  { %s52_s20 = sld [smem:[#allocation3 + $0x1]] }
   0x8   :  { %17 = vsyncpa [#allocation5], 0  ;;  %v26_v0 = vld [vmem:[%s139_s2] sm:$0xff]  ;;  %s96_s0 = smov [#allocation4]   ;;  %s43_s30 = sshll.u32 %s141_s4, 4  ;;  %s44_s30 = int_to_ptr.hbm [resolvable:$true] %s43_s30 }
   0x9   :  { %v31_v1 = vld [vmem:[%s140_s3] sm:$0xff]  ;;  %s41_s27 = sshll.u32 %s96_s0, 4  ;;  %s42_s27 = int_to_ptr.vmem [resolvable:$true] %s41_s27 }
   0xa   :  { %v24_v2 = vld [vmem:[%s138_s1] sm:$0xff] }
   0xc   :  { %v27_v3 = vstv %s25_s19 }
   0xd   :  { %v28_v4 = vmul.f32 %v27_v3, %v26_v0  ;;  %v32_v5 = vstv %s52_s20 }
   0xe   :  { %v33_v6 = vmul.f32 %v32_v5, %v31_v1 }
   0xf   :  { %v29_v7 = vadd.f32 %v28_v4, %v24_v2 }
  0x11   :  { %v34_v8 = vadd.f32 %v33_v6, %v29_v7 }
  0x13   :  { %35 = vst [vmem:[#allocation4] sm:$0xff] %v34_v8 }
  0x14   :  { %46 = dma.vmem_to_hbm [thread:$0]  %s42_s27, 128, %s44_s30, [#allocation5]  }
  0x15   :  { %93 = dma.done.wait [#allocation5], 128  }
  0x16   :  { %94 = vsyncadd [#allocation5], 4294967168 }
  0x17   :  { %51 = vsyncpa [#allocation5], 1 }

</bundles_post_ra>
